<compile_context>
chip_gen: v6e
topology: v6e:2x2x1
jax: 0.10.0
libtpu: 0.0.40
codegen_flags: <defaults>
</compile_context>

<pallas_src>
import jax
import jax.numpy as jnp
from jax import lax
from jax.experimental import pallas as pl
from jax.experimental.pallas import tpu as pltpu


_BN_EPS = 1e-5


def _ssl_head_hidden_kernel(x_ref, w1_ref, gamma_ref, beta_ref, w2_ref, b2_ref, o_ref):
    """Fused Linear(no bias) -> BatchNorm1d(batch stats) -> ReLU -> Linear(+bias)."""
    x = x_ref[...]                                                    # (B, D)
    h = jnp.dot(x, w1_ref[...], preferred_element_type=jnp.float32)  # (B, H)

    # BatchNorm1d (training-mode batch statistics, biased variance).
    mean = jnp.mean(h, axis=0, keepdims=True)                         # (1, H)
    var = jnp.mean((h - mean) ** 2, axis=0, keepdims=True)            # (1, H)
    h_bn = (h - mean) * lax.rsqrt(var + _BN_EPS)                      # EUP rsqrt
    h_bn = h_bn * gamma_ref[...] + beta_ref[...]

    h_relu = jnp.maximum(h_bn, 0.0)

    logits = jnp.dot(h_relu, w2_ref[...],
                     preferred_element_type=jnp.float32) + b2_ref[...]
    o_ref[...] = logits.astype(o_ref.dtype)


def _ssl_head_linear_kernel(x_ref, w_ref, b_ref, o_ref):
    """n_hidden=None branch: single Linear(+bias) on the flattened input."""
    logits = jnp.dot(x_ref[...], w_ref[...],
                     preferred_element_type=jnp.float32) + b_ref[...]
    o_ref[...] = logits.astype(o_ref.dtype)


def ssl_evaluator_forward(x, params, *, n_hidden=None):
    """Pallas equivalent of SSLEvaluator(...).forward(x) (p=0.0 dropout)."""
    B = x.shape[0]
    # Flatten: pure metadata reshape in JAX (zero-copy) — no kernel needed.
    xf = x.reshape(B, -1)
    D = xf.shape[1]
    # Dropout(p=0.0) is the identity.

    if n_hidden is None:
        w, b = params["w"], params["b"]
        n_classes = w.shape[0]
        wt = w.T                          # (D, C) lane-dense RHS
        b2d = b.reshape(1, n_classes)
        return pl.pallas_call(
            _ssl_head_linear_kernel,
            out_shape=jax.ShapeDtypeStruct((B, n_classes), x.dtype),
            grid=(1,),
            in_specs=[
                pl.BlockSpec((B, D), lambda i: (0, 0)),
                pl.BlockSpec((D, n_classes), lambda i: (0, 0)),
                pl.BlockSpec((1, n_classes), lambda i: (0, 0)),
            ],
            out_specs=pl.BlockSpec((B, n_classes), lambda i: (0, 0)),
            compiler_params=pltpu.CompilerParams(
                dimension_semantics=("parallel",)),
        )(xf, wt, b2d)

    w1, gamma, beta = params["w1"], params["gamma"], params["beta"]
    w2, b2 = params["w2"], params["b2"]
    H = w1.shape[0]
    n_classes = w2.shape[0]
    w1t = w1.T                            # (D, H)
    w2t = w2.T                            # (H, C)
    gamma2d = gamma.reshape(1, H)
    beta2d = beta.reshape(1, H)
    b2_2d = b2.reshape(1, n_classes)

    return pl.pallas_call(
        _ssl_head_hidden_kernel,
        out_shape=jax.ShapeDtypeStruct((B, n_classes), x.dtype),
        grid=(1,),
        in_specs=[
            pl.BlockSpec((B, D), lambda i: (0, 0)),
            pl.BlockSpec((D, H), lambda i: (0, 0)),
            pl.BlockSpec((1, H), lambda i: (0, 0)),
            pl.BlockSpec((1, H), lambda i: (0, 0)),
            pl.BlockSpec((H, n_classes), lambda i: (0, 0)),
            pl.BlockSpec((1, n_classes), lambda i: (0, 0)),
        ],
        out_specs=pl.BlockSpec((B, n_classes), lambda i: (0, 0)),
        compiler_params=pltpu.CompilerParams(
            dimension_semantics=("parallel",)),
    )(xf, w1t, gamma2d, beta2d, w2t, b2_2d)


def _ref_forward(x, params, n_hidden=None):
    """Pure-JAX reference matching the PyTorch forward (p=0, BN train-mode stats)."""
    xf = x.reshape(x.shape[0], -1)
    if n_hidden is None:
        return xf @ params["w"].T + params["b"]
    h = xf @ params["w1"].T
    mean = h.mean(axis=0)
    var = ((h - mean) ** 2).mean(axis=0)
    h = (h - mean) * lax.rsqrt(var + _BN_EPS) * params["gamma"] + params["beta"]
    h = jnp.maximum(h, 0.0)
    return h @ params["w2"].T + params["b2"]


if __name__ == "__main__":
    key = jax.random.PRNGKey(0)
    B, C, Hs, Ws = 2, 4, 16, 16
    n_input = C * Hs * Ws           # 1024
    n_hidden = 32
    n_classes = 10

    ks = jax.random.split(key, 9)
    x = jax.random.normal(ks[0], (B, C, Hs, Ws), dtype=jnp.float32)

    params_hidden = {
        "w1": jax.random.normal(ks[1], (n_hidden, n_input), jnp.float32)
              / jnp.sqrt(float(n_input)),
        "gamma": 1.0 + 0.1 * jax.random.normal(ks[2], (n_hidden,), jnp.float32),
        "beta": 0.1 * jax.random.normal(ks[3], (n_hidden,), jnp.float32),
        "w2": jax.random.normal(ks[4], (n_classes, n_hidden), jnp.float32)
              / jnp.sqrt(float(n_hidden)),
        "b2": 0.1 * jax.random.normal(ks[5], (n_classes,), jnp.float32),
    }
    params_linear = {
        "w": jax.random.normal(ks[6], (n_classes, n_input), jnp.float32)
             / jnp.sqrt(float(n_input)),
        "b": 0.1 * jax.random.normal(ks[7], (n_classes,), jnp.float32),
    }

    out_h = jax.block_until_ready(
        ssl_evaluator_forward(x, params_hidden, n_hidden=n_hidden))
    out_l = jax.block_until_ready(
        ssl_evaluator_forward(x, params_linear, n_hidden=None))

    ref_h = _ref_forward(x, params_hidden, n_hidden=n_hidden)
    ref_l = _ref_forward(x, params_linear, n_hidden=None)

    assert out_h.shape == (B, n_classes), out_h.shape
    assert out_l.shape == (B, n_classes), out_l.shape
    assert jnp.allclose(out_h, ref_h, rtol=1e-3, atol=1e-3), "hidden-branch mismatch"
    assert jnp.allclose(out_l, ref_l, rtol=1e-3, atol=1e-3), "linear-branch mismatch"

    print("KERNEL_OK")
</pallas_src>

<mosaic_0001>
module attributes {stable_mosaic.version = 11 : i64} {
  func.func @_ssl_head_hidden_kernel(%arg0: i32, %arg1: memref<2x1024xf32, #tpu.memory_space<vmem>>, %arg2: memref<1024x32xf32, #tpu.memory_space<vmem>>, %arg3: memref<1x32xf32, #tpu.memory_space<vmem>>, %arg4: memref<1x32xf32, #tpu.memory_space<vmem>>, %arg5: memref<32x10xf32, #tpu.memory_space<vmem>>, %arg6: memref<1x10xf32, #tpu.memory_space<vmem>>, %arg7: memref<2x10xf32, #tpu.memory_space<vmem>>) attributes {dimension_semantics = [#tpu.dimension_semantics<parallel>], iteration_bounds = array<i64: 1>, scalar_prefetch = 0 : i64, scratch_operands = 0 : i64, tpu.core_type = #tpu.core_type<tc>, window_params = [{pipeline_mode = #tpu.pipeline_mode<synchronous>, transform_indices = @transform_0, window_bounds = array<i64: 2, 1024>}, {pipeline_mode = #tpu.pipeline_mode<synchronous>, transform_indices = @transform_1, window_bounds = array<i64: 1024, 32>}, {pipeline_mode = #tpu.pipeline_mode<synchronous>, transform_indices = @transform_2, window_bounds = array<i64: 1, 32>}, {pipeline_mode = #tpu.pipeline_mode<synchronous>, transform_indices = @transform_3, window_bounds = array<i64: 1, 32>}, {pipeline_mode = #tpu.pipeline_mode<synchronous>, transform_indices = @transform_4, window_bounds = array<i64: 32, 10>}, {pipeline_mode = #tpu.pipeline_mode<synchronous>, transform_indices = @transform_5, window_bounds = array<i64: 1, 10>}, {pipeline_mode = #tpu.pipeline_mode<synchronous>, transform_indices = @transform_6, window_bounds = array<i64: 2, 10>}]} {
    %c0 = arith.constant 0 : index
    %c0_0 = arith.constant 0 : index
    %0 = vector.load %arg1[%c0, %c0_0] : memref<2x1024xf32, #tpu.memory_space<vmem>>, vector<2x1024xf32>
    %c0_1 = arith.constant 0 : index
    %c0_2 = arith.constant 0 : index
    %1 = vector.load %arg2[%c0_1, %c0_2] : memref<1024x32xf32, #tpu.memory_space<vmem>>, vector<1024x32xf32>
    %cst = arith.constant dense<0.000000e+00> : vector<2x32xf32>
    %2 = tpu.matmul %0, %1, %cst {dimension_numbers = #tpu.dot_dimension_numbers<[1], [0], [0], [1], [0, 0, 1, 1], [], []>} : vector<2x1024xf32>, vector<1024x32xf32>, vector<2x32xf32> -> vector<2x32xf32>
    %cst_3 = arith.constant dense<0.000000e+00> : vector<32xf32>
    %3 = vector.multi_reduction <add>, %2, %cst_3 [0] : vector<2x32xf32> to vector<32xf32>
    %4 = vector.shape_cast %3 : vector<32xf32> to vector<1x32xf32>
    %cst_4 = arith.constant 2.000000e+00 : f32
    %5 = vector.broadcast %cst_4 : f32 to vector<1x32xf32>
    %6 = arith.divf %4, %5 : vector<1x32xf32>
    %7 = vector.broadcast %6 : vector<1x32xf32> to vector<2x32xf32>
    %8 = arith.subf %2, %7 : vector<2x32xf32>
    %9 = arith.mulf %8, %8 : vector<2x32xf32>
    %cst_5 = arith.constant dense<0.000000e+00> : vector<32xf32>
    %10 = vector.multi_reduction <add>, %9, %cst_5 [0] : vector<2x32xf32> to vector<32xf32>
    %11 = vector.shape_cast %10 : vector<32xf32> to vector<1x32xf32>
    %cst_6 = arith.constant 2.000000e+00 : f32
    %12 = vector.broadcast %cst_6 : f32 to vector<1x32xf32>
    %13 = arith.divf %11, %12 : vector<1x32xf32>
    %14 = vector.broadcast %6 : vector<1x32xf32> to vector<2x32xf32>
    %15 = arith.subf %2, %14 : vector<2x32xf32>
    %cst_7 = arith.constant 9.99999974E-6 : f32
    %16 = vector.broadcast %cst_7 : f32 to vector<1x32xf32>
    %17 = arith.addf %13, %16 : vector<1x32xf32>
    %18 = math.rsqrt %17 : vector<1x32xf32>
    %19 = vector.broadcast %18 : vector<1x32xf32> to vector<2x32xf32>
    %20 = arith.mulf %15, %19 : vector<2x32xf32>
    %c0_8 = arith.constant 0 : index
    %c0_9 = arith.constant 0 : index
    %21 = vector.load %arg3[%c0_8, %c0_9] : memref<1x32xf32, #tpu.memory_space<vmem>>, vector<1x32xf32>
    %22 = vector.broadcast %21 : vector<1x32xf32> to vector<2x32xf32>
    %23 = arith.mulf %20, %22 : vector<2x32xf32>
    %c0_10 = arith.constant 0 : index
    %c0_11 = arith.constant 0 : index
    %24 = vector.load %arg4[%c0_10, %c0_11] : memref<1x32xf32, #tpu.memory_space<vmem>>, vector<1x32xf32>
    %25 = vector.broadcast %24 : vector<1x32xf32> to vector<2x32xf32>
    %26 = arith.addf %23, %25 : vector<2x32xf32>
    %cst_12 = arith.constant 0.000000e+00 : f32
    %27 = vector.broadcast %cst_12 : f32 to vector<2x32xf32>
    %28 = arith.maximumf %26, %27 : vector<2x32xf32>
    %c0_13 = arith.constant 0 : index
    %c0_14 = arith.constant 0 : index
    %29 = vector.load %arg5[%c0_13, %c0_14] : memref<32x10xf32, #tpu.memory_space<vmem>>, vector<32x10xf32>
    %cst_15 = arith.constant dense<0.000000e+00> : vector<2x10xf32>
    %30 = tpu.matmul %28, %29, %cst_15 {dimension_numbers = #tpu.dot_dimension_numbers<[1], [0], [0], [1], [0, 0, 1, 1], [], []>} : vector<2x32xf32>, vector<32x10xf32>, vector<2x10xf32> -> vector<2x10xf32>
    %c0_16 = arith.constant 0 : index
    %c0_17 = arith.constant 0 : index
    %31 = vector.load %arg6[%c0_16, %c0_17] : memref<1x10xf32, #tpu.memory_space<vmem>>, vector<1x10xf32>
    %32 = vector.broadcast %31 : vector<1x10xf32> to vector<2x10xf32>
    %33 = arith.addf %30, %32 : vector<2x10xf32>
    %c0_18 = arith.constant 0 : index
    %c0_19 = arith.constant 0 : index
    %34 = vector.load %arg7[%c0_18, %c0_19] : memref<2x10xf32, #tpu.memory_space<vmem>>, vector<2x10xf32>
    tpu.vector_store %arg7[%c0_18, %c0_19], %33 {strides = array<i32>} : memref<2x10xf32, #tpu.memory_space<vmem>>, vector<2x10xf32>,
    return
  }
  func.func @transform_0(%arg0: i32) -> (i32, i32) {
    %c0_i32 = arith.constant 0 : i32
    %c0_i32_0 = arith.constant 0 : i32
    %c0_i32_1 = arith.constant 0 : i32
    return %c0_i32, %c0_i32_0 : i32, i32
  }
  func.func @transform_1(%arg0: i32) -> (i32, i32) {
    %c0_i32 = arith.constant 0 : i32
    %c0_i32_0 = arith.constant 0 : i32
    %c0_i32_1 = arith.constant 0 : i32
    return %c0_i32, %c0_i32_0 : i32, i32
  }
  func.func @transform_2(%arg0: i32) -> (i32, i32) {
    %c0_i32 = arith.constant 0 : i32
    %c0_i32_0 = arith.constant 0 : i32
    %c0_i32_1 = arith.constant 0 : i32
    return %c0_i32, %c0_i32_0 : i32, i32
  }
  func.func @transform_3(%arg0: i32) -> (i32, i32) {
    %c0_i32 = arith.constant 0 : i32
    %c0_i32_0 = arith.constant 0 : i32
    %c0_i32_1 = arith.constant 0 : i32
    return %c0_i32, %c0_i32_0 : i32, i32
  }
  func.func @transform_4(%arg0: i32) -> (i32, i32) {
    %c0_i32 = arith.constant 0 : i32
    %c0_i32_0 = arith.constant 0 : i32
    %c0_i32_1 = arith.constant 0 : i32
    return %c0_i32, %c0_i32_0 : i32, i32
  }
  func.func @transform_5(%arg0: i32) -> (i32, i32) {
    %c0_i32 = arith.constant 0 : i32
    %c0_i32_0 = arith.constant 0 : i32
    %c0_i32_1 = arith.constant 0 : i32
    return %c0_i32, %c0_i32_0 : i32, i32
  }
  func.func @transform_6(%arg0: i32) -> (i32, i32) {
    %c0_i32 = arith.constant 0 : i32
    %c0_i32_0 = arith.constant 0 : i32
    %c0_i32_1 = arith.constant 0 : i32
    return %c0_i32, %c0_i32_0 : i32, i32
  }
}

</mosaic_0001>

<bundles_post_ra>
// kernel: tpu_custom_call.1
= control target key start
LH: loop header
LB: loop body
LE: loop exit
PB: predicated region body
PF: predicated region fallthrough
CT: control target
= control target key end

     0   :  { %v809_v30 = vmov 1983009808   ;;  %v160_v32 = vlaneseq  ;;  %s1268_s0 = inlined_call_operand.vmem [shape: f32[2,1024], index: 0, kind: input, shape index: {}]   ;;  %s1269_s1 = inlined_call_operand.vmem [shape: f32[1024,32], index: 1, kind: input, shape index: {}]   ;;  %s1270_s2 = inlined_call_operand.vmem [shape: f32[1,32], index: 2, kind: input, shape index: {}]   ;;  %s1271_s3 = inlined_call_operand.vmem [shape: f32[1,32], index: 3, kind: input, shape index: {}]   ;;  %s1272_s4 = inlined_call_operand.vmem [shape: f32[32,10], index: 4, kind: input, shape index: {}]   ;;  %s1273_s5 = inlined_call_operand.vmem [shape: f32[1,10], index: 5, kind: input, shape index: {}]   ;;  %s1274_s6 = inlined_call_operand.hbm [shape: f32[2,10], index: 6, kind: output, shape index: {}]  }
   0x1   :  { %v57_v0 = vld [vmem:[%s1269_s1 + $0xf8] sm:$0xff]  ;;  %v56_v4 = vld [vmem:[%s1269_s1 + $0xf0] sm:$0xff]  ;;  %v55_v8 = vld [vmem:[%s1269_s1 + $0xe8] sm:$0xff]  ;;  %v158_v31 = vunpack.c.l.s4 %v809_v30 }
   0x2   :  { %v89_v1 = vld [vmem:[%s1269_s1 + $0x1f8] sm:$0xff]  ;;  %623 = vmatprep.subr.mxu0 %v57_v0  ;;  %v88_v5 = vld [vmem:[%s1269_s1 + $0x1f0] sm:$0xff]  ;;  %v87_v9 = vld [vmem:[%s1269_s1 + $0x1e8] sm:$0xff]  ;;  %v161_v42 = vshrl.u32 %v160_v32, 7 }
   0x3   :  { %v41_v2 = vld [vmem:[%s1269_s1 + $0x78] sm:$0xff]  ;;  %658 = vmatprep.subr.mxu1 %v89_v1  ;;  %v40_v6 = vld [vmem:[%s1269_s1 + $0x70] sm:$0xff]  ;;  %v39_v10 = vld [vmem:[%s1269_s1 + $0x68] sm:$0xff]  ;;  %v159_v41 = vunpack.c.0.s8 %v158_v31 }
   0x4   :  { %v73_v3 = vld [vmem:[%s1269_s1 + $0x178] sm:$0xff]  ;;  %624 = vmatpush3.msra.mxu0 %v41_v2  ;;  %v72_v7 = vld [vmem:[%s1269_s1 + $0x170] sm:$0xff]  ;;  %v71_v11 = vld [vmem:[%s1269_s1 + $0x168] sm:$0xff] }
   0x5   :  { %659 = vmatpush3.msra.mxu1 %v73_v3  ;;  %625 = vmatprep.subr.mxu0 %v56_v4  ;;  %v54_v12 = vld [vmem:[%s1269_s1 + $0xe0] sm:$0xff]  ;;  %v53_v16 = vld [vmem:[%s1269_s1 + $0xd8] sm:$0xff]  ;;  %v52_v20 = vld [vmem:[%s1269_s1 + $0xd0] sm:$0xff]  ;;  %v986_v51 = vsub.s32 %v159_v41, %v161_v42 }
   0x6   :  { %660 = vmatprep.subr.mxu1 %v88_v5  ;;  %626 = vmatpush3.msra.mxu0 %v40_v6  ;;  %v86_v13 = vld [vmem:[%s1269_s1 + $0x1e0] sm:$0xff]  ;;  %v85_v17 = vld [vmem:[%s1269_s1 + $0x1d8] sm:$0xff]  ;;  %v84_v21 = vld [vmem:[%s1269_s1 + $0x1d0] sm:$0xff] }
   0x7   :  { %661 = vmatpush3.msra.mxu1 %v72_v7  ;;  %627 = vmatprep.subr.mxu0 %v55_v8  ;;  %v38_v14 = vld [vmem:[%s1269_s1 + $0x60] sm:$0xff]  ;;  %v37_v18 = vld [vmem:[%s1269_s1 + $0x58] sm:$0xff]  ;;  %v36_v22 = vld [vmem:[%s1269_s1 + $0x50] sm:$0xff] }
   0x8   :  { %662 = vmatprep.subr.mxu1 %v87_v9  ;;  %v70_v15 = vld [vmem:[%s1269_s1 + $0x160] sm:$0xff]  ;;  %628 = vmatpush3.msra.mxu0 %v39_v10  ;;  %v69_v19 = vld [vmem:[%s1269_s1 + $0x158] sm:$0xff]  ;;  %v68_v23 = vld [vmem:[%s1269_s1 + $0x150] sm:$0xff] }
   0x9   :  { %663 = vmatpush3.msra.mxu1 %v71_v11  ;;  %629 = vmatprep.subr.mxu0 %v54_v12  ;;  %v51_v24 = vld [vmem:[%s1269_s1 + $0xc8] sm:$0xff]  ;;  %v50_v28 = vld [vmem:[%s1269_s1 + $0xc0] sm:$0xff]  ;;  %v49_v35 = vld [vmem:[%s1269_s1 + $0xb8] sm:$0xff] }
   0xa   :  { %664 = vmatprep.subr.mxu1 %v86_v13  ;;  %630 = vmatpush3.msra.mxu0 %v38_v14  ;;  %v83_v25 = vld [vmem:[%s1269_s1 + $0x1c8] sm:$0xff]  ;;  %v82_v29 = vld [vmem:[%s1269_s1 + $0x1c0] sm:$0xff]  ;;  %v81_v36 = vld [vmem:[%s1269_s1 + $0x1b8] sm:$0xff] }
   0xb   :  { %665 = vmatpush3.msra.mxu1 %v70_v15  ;;  %631 = vmatprep.subr.mxu0 %v53_v16  ;;  %v35_v26 = vld [vmem:[%s1269_s1 + $0x48] sm:$0xff]  ;;  %v34_v33 = vld [vmem:[%s1269_s1 + $0x40] sm:$0xff]  ;;  %v33_v37 = vld [vmem:[%s1269_s1 + $0x38] sm:$0xff] }
   0xc   :  { %666 = vmatprep.subr.mxu1 %v85_v17  ;;  %632 = vmatpush3.msra.mxu0 %v37_v18  ;;  %v67_v27 = vld [vmem:[%s1269_s1 + $0x148] sm:$0xff]  ;;  %v66_v34 = vld [vmem:[%s1269_s1 + $0x140] sm:$0xff]  ;;  %v65_v38 = vld [vmem:[%s1269_s1 + $0x138] sm:$0xff] }
   0xd   :  { %667 = vmatpush3.msra.mxu1 %v69_v19  ;;  %633 = vmatprep.subr.mxu0 %v52_v20  ;;  %v48_v39 = vld [vmem:[%s1269_s1 + $0xb0] sm:$0xff]  ;;  %v47_v45 = vld [vmem:[%s1269_s1 + $0xa8] sm:$0xff]  ;;  %v46_v49 = vld [vmem:[%s1269_s1 + $0xa0] sm:$0xff] }
   0xe   :  { %668 = vmatprep.subr.mxu1 %v84_v21  ;;  %634 = vmatpush3.msra.mxu0 %v36_v22  ;;  %v80_v40 = vld [vmem:[%s1269_s1 + $0x1b0] sm:$0xff]  ;;  %v79_v46 = vld [vmem:[%s1269_s1 + $0x1a8] sm:$0xff]  ;;  %v78_v50 = vld [vmem:[%s1269_s1 + $0x1a0] sm:$0xff] }
   0xf   :  { %669 = vmatpush3.msra.mxu1 %v68_v23  ;;  %635 = vmatprep.subr.mxu0 %v51_v24  ;;  %v32_v43 = vld [vmem:[%s1269_s1 + $0x30] sm:$0xff]  ;;  %v31_v47 = vld [vmem:[%s1269_s1 + $0x28] sm:$0xff]  ;;  %v30_v52 = vld [vmem:[%s1269_s1 + $0x20] sm:$0xff] }
  0x10   :  { %670 = vmatprep.subr.mxu1 %v83_v25  ;;  %636 = vmatpush3.msra.mxu0 %v35_v26  ;;  %v64_v44 = vld [vmem:[%s1269_s1 + $0x130] sm:$0xff]  ;;  %v63_v48 = vld [vmem:[%s1269_s1 + $0x128] sm:$0xff]  ;;  %v62_v53 = vld [vmem:[%s1269_s1 + $0x120] sm:$0xff] }
  0x11   :  { %671 = vmatpush3.msra.mxu1 %v67_v27  ;;  %637 = vmatprep.subr.mxu0 %v50_v28  ;;  %v24_v54 = vld [vmem:[%s1268_s0] sm:$0xff]  ;;  %v45_v55 = vld [vmem:[%s1269_s1 + $0x98] sm:$0xff]  ;;  %v44_v60 = vld [vmem:[%s1269_s1 + $0x90] sm:$0xff] }
  0x12   :  { %672 = vmatprep.subr.mxu1 %v82_v29  ;;  %638 = vmatpush3.msra.mxu0 %v34_v33  ;;  %v77_v56 = vld [vmem:[%s1269_s1 + $0x198] sm:$0xff]  ;;  %v156_v57 = vcombine.high %v24_v54, %v24_v54  ;;  %v76_v61 = vld [vmem:[%s1269_s1 + $0x190] sm:$0xff]  ;;  %v163_v62 = vrot.slane %v24_v54, %v986_v51  ;;  %v43_v2 = vld [vmem:[%s1269_s1 + $0x88] sm:$0xff] }
  0x13   :  { %673 = vmatpush3.msra.mxu1 %v66_v34  ;;  %639 = vmatprep.subr.mxu0 %v49_v35  ;;  %v29_v58 = vld [vmem:[%s1269_s1 + $0x18] sm:$0xff]  ;;  %v28_v63 = vld [vmem:[%s1269_s1 + $0x10] sm:$0xff]  ;;  %v75_v3 = vld [vmem:[%s1269_s1 + $0x188] sm:$0xff] }
  0x14   :  { %674 = vmatprep.subr.mxu1 %v81_v36  ;;  %640 = vmatpush3.msra.mxu0 %v33_v37  ;;  %v61_v59 = vld [vmem:[%s1269_s1 + $0x118] sm:$0xff]  ;;  %v60_v0 = vld [vmem:[%s1269_s1 + $0x110] sm:$0xff]  ;;  %v170_v1 = vrot.slane %v156_v57, %v986_v51  ;;  %v27_v4 = vld [vmem:[%s1269_s1 + $0x8] sm:$0xff]  ;;  %v171_v8 = vcombine.high %v163_v62, %v163_v62 }
  0x15   :  { %675 = vmatpush3.msra.mxu1 %v65_v38  ;;  %641 = vmatprep.subr.mxu0 %v48_v39  ;;  %v59_v5 = vld [vmem:[%s1269_s1 + $0x108] sm:$0xff]  ;;  %v42_v6 = vld [vmem:[%s1269_s1 + $0x80] sm:$0xff]  ;;  %v121_v12 = vld [vmem:[%s1269_s1 + $0x2f8] sm:$0xff] }
  0x16   :  { %676 = vmatprep.subr.mxu1 %v80_v40  ;;  %642 = vmatpush3.msra.mxu0 %v32_v43  ;;  %v74_v7 = vld [vmem:[%s1269_s1 + $0x180] sm:$0xff]  ;;  %v172_v10 = vcombine.high %v170_v1, %v170_v1  ;;  %v153_v13 = vld [vmem:[%s1269_s1 + $0x3f8] sm:$0xff]  ;;  %v120_v16 = vld [vmem:[%s1269_s1 + $0x2f0] sm:$0xff] }
  0x17   :  { %677 = vmatpush3.msra.mxu1 %v64_v44  ;;  %643 = vmatprep.subr.mxu0 %v47_v45  ;;  %v26_v9 = vld [vmem:[%s1269_s1] sm:$0xff]  ;;  %v105_v14 = vld [vmem:[%s1269_s1 + $0x278] sm:$0xff]  ;;  %v152_v17 = vld [vmem:[%s1269_s1 + $0x3f0] sm:$0xff] }
  0x18   :  { %678 = vmatprep.subr.mxu1 %v79_v46  ;;  %644 = vmatpush3.msra.mxu0 %v31_v47  ;;  %v58_v11 = vld [vmem:[%s1269_s1 + $0x100] sm:$0xff]  ;;  %v137_v15 = vld [vmem:[%s1269_s1 + $0x378] sm:$0xff]  ;;  %v104_v18 = vld [vmem:[%s1269_s1 + $0x270] sm:$0xff] }
  0x19   :  { %679 = vmatpush3.msra.mxu1 %v63_v48  ;;  %645 = vmatprep.subr.mxu0 %v46_v49  ;;  %v136_v19 = vld [vmem:[%s1269_s1 + $0x370] sm:$0xff]  ;;  %v119_v20 = vld [vmem:[%s1269_s1 + $0x2e8] sm:$0xff]  ;;  %v118_v24 = vld [vmem:[%s1269_s1 + $0x2e0] sm:$0xff] }
  0x1a   :  { %680 = vmatprep.subr.mxu1 %v78_v50  ;;  %646 = vmatpush3.msra.mxu0 %v30_v52  ;;  %v151_v21 = vld [vmem:[%s1269_s1 + $0x3e8] sm:$0xff]  ;;  %v150_v25 = vld [vmem:[%s1269_s1 + $0x3e0] sm:$0xff]  ;;  %v117_v28 = vld [vmem:[%s1269_s1 + $0x2d8] sm:$0xff] }
  0x1b   :  { %681 = vmatpush3.msra.mxu1 %v62_v53  ;;  %647 = vmatprep.subr.mxu0 %v45_v55  ;;  %v103_v22 = vld [vmem:[%s1269_s1 + $0x268] sm:$0xff]  ;;  %v102_v26 = vld [vmem:[%s1269_s1 + $0x260] sm:$0xff]  ;;  %v149_v29 = vld [vmem:[%s1269_s1 + $0x3d8] sm:$0xff] }
  0x1c   :  { %682 = vmatprep.subr.mxu1 %v77_v56  ;;  %648 = vmatpush3.msra.mxu0 %v29_v58  ;;  %v135_v23 = vld [vmem:[%s1269_s1 + $0x368] sm:$0xff]  ;;  %v134_v27 = vld [vmem:[%s1269_s1 + $0x360] sm:$0xff]  ;;  %v101_v30 = vld [vmem:[%s1269_s1 + $0x258] sm:$0xff] }
  0x1d   :  { %683 = vmatpush3.msra.mxu1 %v61_v59  ;;  %649 = vmatprep.subr.mxu0 %v44_v60  ;;  %v133_v31 = vld [vmem:[%s1269_s1 + $0x358] sm:$0xff]  ;;  %v116_v32 = vld [vmem:[%s1269_s1 + $0x2d0] sm:$0xff] }
  0x1e   :  { %684 = vmatprep.subr.mxu1 %v76_v61  ;;  %650 = vmatpush3.msra.mxu0 %v28_v63  ;;  %v148_v33 = vld [vmem:[%s1269_s1 + $0x3d0] sm:$0xff] }
  0x1f   :  { %685 = vmatpush3.msra.mxu1 %v60_v0  ;;  %651 = vmatprep.subr.mxu0 %v43_v2  ;;  %v100_v34 = vld [vmem:[%s1269_s1 + $0x250] sm:$0xff] }
  0x20   :  { %686 = vmatprep.subr.mxu1 %v75_v3  ;;  %652 = vmatpush3.msra.mxu0 %v27_v4  ;;  %v132_v35 = vld [vmem:[%s1269_s1 + $0x350] sm:$0xff] }
  0x21   :  { %687 = vmatpush3.msra.mxu1 %v59_v5  ;;  %653 = vmatprep.subr.mxu0 %v42_v6 }
  0x22   :  { %688 = vmatprep.subr.mxu1 %v74_v7  ;;  %654 = vmatpush3.msra.mxu0 %v26_v9 }
  0x23   :  { %262 = vmatprep.mubr.f32.mxu0 %v171_v8  ;;  %689 = vmatpush3.msra.mxu1 %v58_v11 }
  0x24   :  { %332 = vmatprep.mubr.f32.mxu1 %v172_v10  ;;  %263 = vmatmul.mubr.f32.vlgmr.msra.gmra.mxu0 %v163_v62 }
  0x25   :  { %333 = vmatmul.mubr.f32.vlgmr.msra.gmra.mxu1 %v170_v1  ;;  %693 = vmatprep.subr.mxu0 %v121_v12 }
  0x26   :  { %728 = vmatprep.subr.mxu1 %v153_v13  ;;  %694 = vmatpush3.msra.mxu0 %v105_v14 }
  0x27   :  { %729 = vmatpush3.msra.mxu1 %v137_v15  ;;  %695 = vmatprep.subr.mxu0 %v120_v16 }
  0x28   :  { %730 = vmatprep.subr.mxu1 %v152_v17  ;;  %696 = vmatpush3.msra.mxu0 %v104_v18 }
  0x29   :  { %731 = vmatpush3.msra.mxu1 %v136_v19  ;;  %697 = vmatprep.subr.mxu0 %v119_v20 }
  0x2a   :  { %732 = vmatprep.subr.mxu1 %v151_v21  ;;  %698 = vmatpush3.msra.mxu0 %v103_v22 }
  0x2b   :  { %733 = vmatpush3.msra.mxu1 %v135_v23  ;;  %699 = vmatprep.subr.mxu0 %v118_v24 }
  0x2c   :  { %734 = vmatprep.subr.mxu1 %v150_v25  ;;  %700 = vmatpush3.msra.mxu0 %v102_v26 }
  0x2d   :  { %735 = vmatpush3.msra.mxu1 %v134_v27  ;;  %701 = vmatprep.subr.mxu0 %v117_v28 }
  0x2e   :  { %736 = vmatprep.subr.mxu1 %v149_v29 }
  0x2f   :  { %11 = vsyncpa [#allocation3], 0  ;;  %702 = vmatpush3.msra.mxu0 %v101_v30  ;;  %737 = vmatpush3.msra.mxu1 %v133_v31  ;;  %v115_v36 = vld [vmem:[%s1269_s1 + $0x2c8] sm:$0xff]  ;;  %v114_v40 = vld [vmem:[%s1269_s1 + $0x2c0] sm:$0xff]  ;;  %v810_v18 = vmov 0.0   ;;  %vm811_vm0 = vmmov 0  }
  0x30   :  { %v147_v37 = vld [vmem:[%s1269_s1 + $0x3c8] sm:$0xff]  ;;  %703 = vmatprep.subr.mxu0 %v116_v32  ;;  %738 = vmatprep.subr.mxu1 %v148_v33  ;;  %v146_v41 = vld [vmem:[%s1269_s1 + $0x3c0] sm:$0xff]  ;;  %v113_v44 = vld [vmem:[%s1269_s1 + $0x2b8] sm:$0xff]  ;;  %vm478_vm1 = vcmask 254976   ;;  %vm529_vm2 = vcmask 261120   ;;  %s812_s27 = smov [#allocation2]  }
  0x31   :  { %v99_v38 = vld [vmem:[%s1269_s1 + $0x248] sm:$0xff]  ;;  %704 = vmatpush3.msra.mxu0 %v100_v34  ;;  %739 = vmatpush3.msra.mxu1 %v132_v35  ;;  %v98_v42 = vld [vmem:[%s1269_s1 + $0x240] sm:$0xff]  ;;  %v145_v45 = vld [vmem:[%s1269_s1 + $0x3b8] sm:$0xff]  ;;  %s611_s28 = sshll.u32 %s812_s27, 4  ;;  %vm603_vm3 = vcmask 74752   ;;  %s612_s28 = int_to_ptr.vmem [resolvable:$true] %s611_s28 }
  0x32   :  { %v131_v39 = vld [vmem:[%s1269_s1 + $0x348] sm:$0xff]  ;;  %705 = vmatprep.subr.mxu0 %v115_v36  ;;  %740 = vmatprep.subr.mxu1 %v147_v37  ;;  %v130_v43 = vld [vmem:[%s1269_s1 + $0x340] sm:$0xff]  ;;  %v97_v46 = vld [vmem:[%s1269_s1 + $0x238] sm:$0xff]  ;;  %p792_p1 = scmp.lt.s32.totalorder %s612_s28, %s612_s28 }
  0x33   :  { %706 = vmatpush3.msra.mxu0 %v99_v38  ;;  %741 = vmatpush3.msra.mxu1 %v131_v39  ;;  %v129_v47 = vld [vmem:[%s1269_s1 + $0x338] sm:$0xff]  ;;  %v112_v48 = vld [vmem:[%s1269_s1 + $0x2b0] sm:$0xff]  ;;  %v111_v53 = vld [vmem:[%s1269_s1 + $0x2a8] sm:$0xff] }
  0x34   :  { %707 = vmatprep.subr.mxu0 %v114_v40  ;;  %742 = vmatprep.subr.mxu1 %v146_v41  ;;  %v144_v49 = vld [vmem:[%s1269_s1 + $0x3b0] sm:$0xff]  ;;  %v143_v54 = vld [vmem:[%s1269_s1 + $0x3a8] sm:$0xff]  ;;  %v110_v58 = vld [vmem:[%s1269_s1 + $0x2a0] sm:$0xff] }
  0x35   :  { %708 = vmatpush3.msra.mxu0 %v98_v42  ;;  %743 = vmatpush3.msra.mxu1 %v130_v43  ;;  %v96_v50 = vld [vmem:[%s1269_s1 + $0x230] sm:$0xff]  ;;  %v25_v55 = vld [vmem:[%s1268_s0 + $0x8] sm:$0xff]  ;;  %v142_v59 = vld [vmem:[%s1269_s1 + $0x3a0] sm:$0xff] }
  0x36   :  { %709 = vmatprep.subr.mxu0 %v113_v44  ;;  %744 = vmatprep.subr.mxu1 %v145_v45  ;;  %v128_v52 = vld [vmem:[%s1269_s1 + $0x330] sm:$0xff]  ;;  %v95_v56 = vld [vmem:[%s1269_s1 + $0x228] sm:$0xff]  ;;  %v94_v60 = vld [vmem:[%s1269_s1 + $0x220] sm:$0xff]  ;;  %v173_v62 = vcombine.high %v25_v55, %v25_v55  ;;  %v180_v5 = vrot.slane %v25_v55, %v986_v51 }
  0x37   :  { %710 = vmatpush3.msra.mxu0 %v97_v46  ;;  %745 = vmatpush3.msra.mxu1 %v129_v47  ;;  %v127_v57 = vld [vmem:[%s1269_s1 + $0x328] sm:$0xff]  ;;  %v126_v61 = vld [vmem:[%s1269_s1 + $0x320] sm:$0xff]  ;;  %v109_v63 = vld [vmem:[%s1269_s1 + $0x298] sm:$0xff] }
  0x38   :  { %711 = vmatprep.subr.mxu0 %v112_v48  ;;  %746 = vmatprep.subr.mxu1 %v144_v49  ;;  %v141_v0 = vld [vmem:[%s1269_s1 + $0x398] sm:$0xff]  ;;  %v108_v3 = vld [vmem:[%s1269_s1 + $0x290] sm:$0xff]  ;;  %v187_v8 = vrot.slane %v173_v62, %v986_v51  ;;  %v107_v9 = vld [vmem:[%s1269_s1 + $0x288] sm:$0xff]  ;;  %v188_v14 = vcombine.high %v180_v5, %v180_v5 }
  0x39   :  { %712 = vmatpush3.msra.mxu0 %v96_v50  ;;  %747 = vmatpush3.msra.mxu1 %v128_v52  ;;  %v93_v1 = vld [vmem:[%s1269_s1 + $0x218] sm:$0xff]  ;;  %v140_v4 = vld [vmem:[%s1269_s1 + $0x390] sm:$0xff]  ;;  %v139_v10 = vld [vmem:[%s1269_s1 + $0x388] sm:$0xff] }
  0x3a   :  { %713 = vmatprep.subr.mxu0 %v111_v53  ;;  %748 = vmatprep.subr.mxu1 %v143_v54  ;;  %v125_v2 = vld [vmem:[%s1269_s1 + $0x318] sm:$0xff]  ;;  %v92_v6 = vld [vmem:[%s1269_s1 + $0x210] sm:$0xff]  ;;  %v91_v11 = vld [vmem:[%s1269_s1 + $0x208] sm:$0xff]  ;;  %v189_v16 = vcombine.high %v187_v8, %v187_v8 }
  0x3b   :  { %714 = vmatpush3.msra.mxu0 %v95_v56  ;;  %749 = vmatpush3.msra.mxu1 %v127_v57  ;;  %v124_v7 = vld [vmem:[%s1269_s1 + $0x310] sm:$0xff]  ;;  %v123_v51 = vld [vmem:[%s1269_s1 + $0x308] sm:$0xff]  ;;  %v106_v12 = vld [vmem:[%s1269_s1 + $0x280] sm:$0xff] }
  0x3c   :  { %715 = vmatprep.subr.mxu0 %v110_v58  ;;  %750 = vmatprep.subr.mxu1 %v142_v59  ;;  %v138_v13 = vld [vmem:[%s1269_s1 + $0x380] sm:$0xff]  ;;  %v521_v19 = vld [vmem:[%s1272_s4 + $0x18] sm:$0xff]  ;;  %v520_v20 = vld [vmem:[%s1272_s4 + $0x10] sm:$0xff] }
  0x3d   :  { %716 = vmatpush3.msra.mxu0 %v94_v60  ;;  %751 = vmatpush3.msra.mxu1 %v126_v61  ;;  %v90_v15 = vld [vmem:[%s1269_s1 + $0x200] sm:$0xff]  ;;  %v519_v21 = vld [vmem:[%s1272_s4 + $0x8] sm:$0xff] }
  0x3e   :  { %717 = vmatprep.subr.mxu0 %v109_v63  ;;  %752 = vmatprep.subr.mxu1 %v141_v0  ;;  %v122_v17 = vld [vmem:[%s1269_s1 + $0x300] sm:$0xff] }
  0x3f   :  { %718 = vmatpush3.msra.mxu0 %v93_v1  ;;  %753 = vmatpush3.msra.mxu1 %v125_v2  ;;  %v518_v22 = vld [vmem:[%s1272_s4] sm:$0xff] }
  0x40   :  { %719 = vmatprep.subr.mxu0 %v108_v3  ;;  %754 = vmatprep.subr.mxu1 %v140_v4  ;;  %v619_v59 = vld [vmem:[%s1270_s2] ss:$0 sm:$0xff]  ;;  %s787_s2 = scalar_lea.vmem %s612_s28, 32 }
  0x41   :  { %720 = vmatpush3.msra.mxu0 %v92_v6  ;;  %755 = vmatpush3.msra.mxu1 %v124_v7  ;;  %v620_v61 = vld [vmem:[%s1271_s3] ss:$0 sm:$0xff]  ;;  %p788_p0 = scmp.ne.s32.totalorder %s612_s28, %s787_s2  ;;  %p793_p2 = scmp.lt.s32.totalorder %s787_s2, %s787_s2 }
  0x42   :  { %721 = vmatprep.subr.mxu0 %v107_v9  ;;  %756 = vmatprep.subr.mxu1 %v139_v10  ;;  %v621_v1 = vld [vmem:[%s1273_s5] ss:$0 sm:$0xff] }
  0x43   :  { %722 = vmatpush3.msra.mxu0 %v91_v11  ;;  %757 = vmatpush3.msra.mxu1 %v123_v51  ;;  %p794_p3 = por %p793_p2, %p792_p1 }
  0x44   :  { %723 = vmatprep.subr.mxu0 %v106_v12  ;;  %758 = vmatprep.subr.mxu1 %v138_v13 }
  0x45   :  { %724 = vmatpush3.msra.mxu0 %v90_v15  ;;  %402 = vmatprep.mubr.f32.mxu0 %v188_v14  ;;  %p795_p4 = pnand %p794_p3, %p788_p0 }
  0x46   :  { %759 = vmatpush3.msra.mxu1 %v122_v17  ;;  %472 = vmatprep.mubr.f32.mxu1 %v189_v16 }
  0x47   :  { %403 = vmatmul.mubr.f32.vlgmr.msra.gmra.mxu0 %v180_v5  ;;  %473 = vmatmul.mubr.f32.vlgmr.msra.gmra.mxu1 %v187_v8 }
  0x48   :  { %768 = vmatprep.subr.mxu0 %v810_v18  ;;  %776 = vmatprep.mubr.msk.f32.mxu0 %vm811_vm0, %v810_v18 }
  0x49   :  { %769 = vmatpush3.msra.mxu0 %v521_v19 }
  0x4a   :  { %770 = vmatprep.subr.mxu0 %v810_v18 }
  0x4b   :  { %771 = vmatpush3.msra.mxu0 %v520_v20 }
  0x4c   :  { %772 = vmatprep.subr.mxu0 %v810_v18 }
  0x4d   :  { %773 = vmatpush3.msra.mxu0 %v519_v21 }
  0x4e   :  { %774 = vmatprep.subr.mxu0 %v810_v18 }
  0x4f   :  { %775 = vmatpush3.msra.mxu0 %v518_v22 }
  0xe4   :  { %v655_v23 = vpop.f32.mrf.mxu0 }
  0xe5   :  { %v690_v24 = vpop.f32.mrf.mxu1 }
  0xe6   :  { %v656_v25 = vpop.f32.mrf.mxu0 }
  0xe7   :  { %v691_v26 = vpop.f32.mrf.mxu1  ;;  %v657_v27 = vadd.f32 %v656_v25, %v655_v23 }
  0xe8   :  { %v692_v28 = vadd.f32 %v691_v26, %v690_v24 }
  0xea   :  { %v335_v33 = vadd.f32 %v692_v28, %v657_v27 }
 0x107   :  { %v725_v29 = vpop.f32.mrf.mxu0  ;;  %v760_v30 = vpop.f32.mrf.mxu1 }
 0x109   :  { %v726_v31 = vpop.f32.mrf.mxu0  ;;  %v761_v32 = vpop.f32.mrf.mxu1 }
 0x10a   :  { %v727_v34 = vadd.f32 %v726_v31, %v725_v29  ;;  %v762_v36 = vadd.f32 %v761_v32, %v760_v30 }
 0x10c   :  { %v405_v35 = vadd.f32 %v727_v34, %v335_v33 }
 0x10e   :  { %v475_v37 = vadd.f32 %v762_v36, %v405_v35 }
 0x110   :  { %v479_v38 = vsel %vm478_vm1, %v475_v37, 0.0 }
 0x111   :  { %v480_v39 = vrot.slane %v479_v38, 4 }
 0x113   :  { %v481_v40 = vadd.f32 %v480_v39, %v479_v38 }
 0x115   :  { %v482_v41 = vrot.slane %v481_v40, 2 }
 0x117   :  { %v483_v42 = vadd.f32 %v482_v41, %v481_v40 }
 0x119   :  { %v484_v43 = vrot.slane %v483_v42, 1 }
 0x11b   :  { %v485_v44 = vadd.f32 %v484_v43, %v483_v42 }
 0x11d   :  { %v487_v45 = vmul.f32 0.5, %v485_v44 }
 0x11f   :  { %v488_v46 = vsub.f32 %v475_v37, %v487_v45 }
 0x121   :  { %v489_v47 = vmul.f32 %v488_v46, %v488_v46 }
 0x123   :  { %v490_v48 = vsel %vm478_vm1, %v489_v47, 0.0 }
 0x124   :  { %v491_v49 = vrot.slane %v490_v48, 4 }
 0x126   :  { %v492_v50 = vadd.f32 %v491_v49, %v490_v48 }
 0x128   :  { %v493_v52 = vrot.slane %v492_v50, 2 }
 0x12a   :  { %v494_v53 = vadd.f32 %v493_v52, %v492_v50 }
 0x12c   :  { %v495_v54 = vrot.slane %v494_v53, 1 }
 0x12e   :  { %v496_v55 = vadd.f32 %v495_v54, %v494_v53 }
 0x130   :  { %v497_v56 = vmul.f32 0.5, %v496_v55 }
 0x132   :  { %v498_v57 = vadd.f32 1e-05, %v497_v56 }
 0x134   :  { %785 = vrsqrt.f32 %v498_v57 }
 0x141   :  { %v786_v58 = vpop.eup %785 }
 0x142   :  { %v500_v60 = vmul.f32 %v786_v58, %v488_v46 }
 0x144   :  { %v508_v62 = vmul.f32 %v619_v59, %v500_v60 }
 0x146   :  { %v516_v63 = vadd.f32 %v620_v61, %v508_v62 }
 0x148   :  { %v517_v0 = vmax.f32 %v516_v63, 0.0 }
 0x14a   :  { %777 = vmatmul.mubr.msk.f32.vlgmr.msra.gmra.mxu0 %vm529_vm2, %v517_v0 }
 0x20a   :  { %v599_v2 = vpop.f32.mrf.mxu0 }
 0x20b   :  { %v600_v3 = vadd.f32 %v621_v1, %v599_v2 }
 0x20c   :  { %v778_v4 = vpop.f32.mrf.mxu0 }
 0x20d   :  { %604 = vst.msk [vmem:[#allocation2] sm:$0x3] %vm603_vm3, %v600_v3 }
 0x20e   :  { %798 = shalt.err (!%p795_p4)
}
 0x20f   :  { %614 = dma.vmem_to_hbm [thread:$0]  %s612_s28, 32, %s1274_s6, [#allocation3]  }
 0x210   :  { %807 = dma.done.wait [#allocation3], 32  }
 0x211   :  { %808 = vsyncadd [#allocation3], 4294967264 }
 0x212   :  { %618 = vsyncpa [#allocation3], 1 }

</bundles_post_ra>
